<compile_context>
chip_gen: v6e
topology: v6e:2x2x1
jax: 0.10.0
libtpu: 0.0.40
codegen_flags: <defaults>
</compile_context>

<pallas_src>
import jax
import jax.numpy as jnp
from jax.experimental import pallas as pl
from jax.experimental.pallas import tpu as pltpu

BN_EPS = 1e-5
HIDDEN = 100
OUT = 2
HIDDEN_PAD = 128    # lane-dense hidden width
OUT_COLS = 8        # stored output width (wrapper slices back to 2)
MAX_TILE_N = 1024   # rows per batch tile
MAX_TK = 512        # features_dim tile (K axis)


def _round_up(x, m):
    return (x + m - 1) // m * m


def _vmem_capacity_bytes():
    try:
        info = pltpu.get_tpu_info()
        cap = getattr(info, "vmem_capacity_bytes", None)
        if cap:
            return int(cap)
    except Exception:
        pass
    return 128 << 20


def _vmem_limit(need_bytes):
    cap = _vmem_capacity_bytes()
    # need + slack, floor 16 MiB, never above 3/4 of physical VMEM
    # (~48 MiB on v7x, ~96 MiB on v5e/v6e).
    return int(min(max(need_bytes + (8 << 20), 16 << 20), cap * 3 // 4))


# --------------------------------------------------------------------------
# Kernel A: h' = x @ W1 (K-tiled, f32 accumulation) + per-tile BN partial stats
# --------------------------------------------------------------------------
def _linear1_stats_kernel(x_ref, w1_ref, h_ref, stats_ref, acc_ref):
    k = pl.program_id(1)

    @pl.when(k == 0)
    def _():
        acc_ref[...] = jnp.zeros_like(acc_ref)

    acc_ref[...] += jnp.dot(x_ref[...], w1_ref[...],
                            preferred_element_type=jnp.float32)

    @pl.when(k == pl.num_programs(1) - 1)
    def _():
        h = acc_ref[...]                        # (tile_n, 128) f32, pre-bias
        h_ref[...] = h.astype(h_ref.dtype)      # bf16 stash, streamed to HBM
        # Axis-0 reduction on the MXU (ones-row matmul).  Zero-padded batch
        # rows contribute exactly 0, so no validity mask is needed.
        ones = jnp.ones((1, h.shape[0]), jnp.float32)
        s = jnp.dot(ones, h, preferred_element_type=jnp.float32)        # (1,128)
        sq = jnp.dot(ones, h * h, preferred_element_type=jnp.float32)   # (1,128)
        stats_ref[...] = jnp.concatenate(
            [s, sq, jnp.zeros((6, h.shape[1]), jnp.float32)], axis=0)


# --------------------------------------------------------------------------
# Kernel B: BatchNorm (folded scale/shift) -> ReLU -> Linear(100, 2)
# --------------------------------------------------------------------------
def _bn_relu_linear2_kernel(h_ref, scale_ref, shift_ref, w2_ref, b2_ref, o_ref):
    h = h_ref[...].astype(jnp.float32)
    y = jnp.maximum(h * scale_ref[...] + shift_ref[...], 0.0)
    o_ref[...] = (jnp.dot(y.astype(jnp.bfloat16), w2_ref[...],
                          preferred_element_type=jnp.float32) + b2_ref[...])


def domain_discriminator_forward(features, alpha, params):
    """features: (N, features_dim) float32. alpha only matters for the backward
    pass of ReverseLayerF (forward is identity), so it is unused here."""
    assert features.ndim == 2, features.ndim
    if isinstance(alpha, (int, float)):      # avoid concretization on traced alpha
        assert alpha >= 0, alpha

    n, d = features.shape

    tile_n = min(MAX_TILE_N, _round_up(n, 16))
    padded_n = _round_up(n, tile_n)
    num_tiles = padded_n // tile_n

    if d <= MAX_TK:
        tk, d_pad = d, d
    else:
        tk = MAX_TK
        d_pad = _round_up(d, tk)
    num_k = d_pad // tk

    # ---- pad params (zero padding keeps results exact; gamma MUST be
    #      zero-padded so padded BN columns stay exactly 0) ----
    w1 = jnp.pad(params["w1"],
                 ((0, d_pad - d), (0, HIDDEN_PAD - HIDDEN))).astype(jnp.bfloat16)
    gamma = jnp.pad(params["gamma"], ((0, 0), (0, HIDDEN_PAD - HIDDEN)))
    beta = jnp.pad(params["beta"], ((0, 0), (0, HIDDEN_PAD - HIDDEN)))
    w2 = jnp.pad(params["w2"],
                 ((0, HIDDEN_PAD - HIDDEN), (0, OUT_COLS - OUT))).astype(jnp.bfloat16)
    b2 = jnp.pad(params["b2"], ((0, 0), (0, OUT_COLS - OUT)))
    # b1 is NOT needed: training-mode BN subtracts the batch mean, so the
    # Linear bias cancels exactly in the forward output.

    x = features.astype(jnp.bfloat16)
    if padded_n != n or d_pad != d:
        x = jnp.pad(x, ((0, padded_n - n), (0, d_pad - d)))

    # ---------------- kernel A: h' = x @ W1 + per-tile stats ----------------
    vmem_a = (2 * tile_n * tk * 2              # x tile, double-buffered (bf16)
              + 2 * tk * HIDDEN_PAD * 2        # w1 tile (bf16)
              + 2 * tile_n * HIDDEN_PAD * 2    # h out tile (bf16)
              + 2 * 8 * HIDDEN_PAD * 4         # stats tile
              + tile_n * HIDDEN_PAD * 4)       # accumulator scratch
    cost_a = pl.CostEstimate(
        flops=2 * padded_n * d_pad * HIDDEN_PAD + 4 * padded_n * HIDDEN_PAD,
        transcendentals=0,
        bytes_accessed=(padded_n * d_pad * 2 + num_tiles * d_pad * HIDDEN_PAD * 2
                        + padded_n * HIDDEN_PAD * 2 + num_tiles * 8 * HIDDEN_PAD * 4),
    )
    h_bf16, stats = pl.pallas_call(
        _linear1_stats_kernel,
        out_shape=(jax.ShapeDtypeStruct((padded_n, HIDDEN_PAD), jnp.bfloat16),
                   jax.ShapeDtypeStruct((num_tiles * 8, HIDDEN_PAD), jnp.float32)),
        grid_spec=pltpu.PrefetchScalarGridSpec(
            num_scalar_prefetch=0,
            grid=(num_tiles, num_k),
            in_specs=[
                pl.BlockSpec((tile_n, tk), lambda t, k: (t, k)),        # x
                pl.BlockSpec((tk, HIDDEN_PAD), lambda t, k: (k, 0)),    # w1
            ],
            out_specs=[
                pl.BlockSpec((tile_n, HIDDEN_PAD), lambda t, k: (t, 0)),   # h'
                pl.BlockSpec((8, HIDDEN_PAD), lambda t, k: (t, 0)),        # stats
            ],
            scratch_shapes=[pltpu.VMEM((tile_n, HIDDEN_PAD), jnp.float32)],
        ),
        compiler_params=pltpu.CompilerParams(
            dimension_semantics=("parallel", "arbitrary"),
            vmem_limit_bytes=_vmem_limit(vmem_a),
        ),
        cost_estimate=cost_a,
    )(x, w1)

    # -------- fused BN scale/shift from the per-tile partial stats ----------
    stats = stats.reshape(num_tiles, 8, HIDDEN_PAD)
    sums = jnp.sum(stats[:, 0, :], axis=0)           # sum(h')   (padded rows = 0)
    sqs = jnp.sum(stats[:, 1, :], axis=0)            # sum(h'^2)
    mean = sums / n
    var = sqs / n - mean * mean                       # biased variance
    inv_std = jax.lax.rsqrt(var + BN_EPS)
    g = gamma[0] * inv_std
    scale = g[None, :]                                # (1, 128)
    shift = (beta[0] - mean * g)[None, :]             # b1 already cancelled

    # ---------------- kernel B: BN -> ReLU -> Linear(100, 2) ----------------
    vmem_b = (2 * tile_n * HIDDEN_PAD * 2      # h tile (bf16)
              + 2 * HIDDEN_PAD * OUT_COLS * 2  # w2 (bf16)
              + 2 * tile_n * OUT_COLS * 4      # out tile
              + 8 * HIDDEN_PAD * 4)            # scale/shift/b2
    cost_b = pl.CostEstimate(
        flops=2 * padded_n * HIDDEN_PAD * OUT_COLS + 4 * padded_n * HIDDEN_PAD,
        transcendentals=0,
        bytes_accessed=padded_n * HIDDEN_PAD * 2 + padded_n * OUT_COLS * 4,
    )
    out = pl.pallas_call(
        _bn_relu_linear2_kernel,
        out_shape=jax.ShapeDtypeStruct((padded_n, OUT_COLS), jnp.float32),
        grid_spec=pltpu.PrefetchScalarGridSpec(
            num_scalar_prefetch=0,
            grid=(num_tiles,),
            in_specs=[
                pl.BlockSpec((tile_n, HIDDEN_PAD), lambda t: (t, 0)),   # h'
                pl.BlockSpec((1, HIDDEN_PAD), lambda t: (0, 0)),        # scale
                pl.BlockSpec((1, HIDDEN_PAD), lambda t: (0, 0)),        # shift
                pl.BlockSpec((HIDDEN_PAD, OUT_COLS), lambda t: (0, 0)), # w2
                pl.BlockSpec((1, OUT_COLS), lambda t: (0, 0)),          # b2
            ],
            out_specs=pl.BlockSpec((tile_n, OUT_COLS), lambda t: (t, 0)),
        ),
        compiler_params=pltpu.CompilerParams(
            dimension_semantics=("parallel",),
            vmem_limit_bytes=_vmem_limit(vmem_b),
        ),
        cost_estimate=cost_b,
    )(h_bf16, scale, shift, w2, b2)

    return out[:n, :OUT]


def init_params(key, features_dim):
    """Deterministic init mirroring PyTorch defaults (logical, unpadded shapes):
       Linear: U(-1/sqrt(fan_in), 1/sqrt(fan_in)); BatchNorm: gamma=1, beta=0."""
    k1, k2, k3, k4 = jax.random.split(key, 4)
    bound1 = 1.0 / jnp.sqrt(features_dim)
    bound2 = 1.0 / jnp.sqrt(HIDDEN)
    return {
        "w1": jax.random.uniform(k1, (features_dim, HIDDEN), jnp.float32,
                                 -bound1, bound1),
        "b1": jax.random.uniform(k2, (1, HIDDEN), jnp.float32, -bound1, bound1),
        "gamma": jnp.ones((1, HIDDEN), jnp.float32),
        "beta": jnp.zeros((1, HIDDEN), jnp.float32),
        "w2": jax.random.uniform(k3, (HIDDEN, OUT), jnp.float32, -bound2, bound2),
        "b2": jax.random.uniform(k4, (1, OUT), jnp.float32, -bound2, bound2),
    }


def _reference_f32(features, params):
    """PyTorch-faithful f32 forward (includes b1; training-mode BatchNorm)."""
    h = jnp.dot(features, params["w1"],
                precision=jax.lax.Precision.HIGHEST) + params["b1"]
    mean = jnp.mean(h, axis=0, keepdims=True)
    var = jnp.mean((h - mean) ** 2, axis=0, keepdims=True)        # biased var
    h = (h - mean) / jnp.sqrt(var + BN_EPS) * params["gamma"] + params["beta"]
    h = jnp.maximum(h, 0.0)
    return jnp.dot(h, params["w2"],
                   precision=jax.lax.Precision.HIGHEST) + params["b2"]


def _reference_kernel_contract(features, params):
    """Same math with the kernel's documented low-precision contract baked in
    (bf16 x/W1/h-stash/y/W2, f32 stats).  b1 cancels exactly under
    training-mode BN, matching the kernel's bias folding."""
    x = features.astype(jnp.bfloat16).astype(jnp.float32)
    w1 = params["w1"].astype(jnp.bfloat16).astype(jnp.float32)
    h = jnp.dot(x, w1, precision=jax.lax.Precision.HIGHEST)       # pre-bias h'
    mean = jnp.mean(h, axis=0, keepdims=True)
    var = jnp.mean((h - mean) ** 2, axis=0, keepdims=True)        # biased var
    h_q = h.astype(jnp.bfloat16).astype(jnp.float32)              # bf16 HBM stash
    y = (h_q - mean) / jnp.sqrt(var + BN_EPS) * params["gamma"] + params["beta"]
    y = jnp.maximum(y, 0.0).astype(jnp.bfloat16).astype(jnp.float32)
    w2 = params["w2"].astype(jnp.bfloat16).astype(jnp.float32)
    return jnp.dot(y, w2, precision=jax.lax.Precision.HIGHEST) + params["b2"]


if __name__ == "__main__":
    key = jax.random.PRNGKey(0)
    k_x, k_p = jax.random.split(key)

    batch, features_dim = 8, 32
    x = jax.random.normal(k_x, (batch, features_dim), jnp.float32)
    alpha = 0.5

    params = init_params(k_p, features_dim)

    out = domain_discriminator_forward(x, alpha, params)
    out = jax.block_until_ready(out)
    assert out.shape == (batch, OUT), out.shape

    # Strict check against a reference that mirrors the kernel's bf16 contract.
    ref_c = _reference_kernel_contract(x, params)
    err_c = float(jnp.max(jnp.abs(out - ref_c)))
    assert jnp.allclose(out, ref_c, atol=2e-3, rtol=2e-3), err_c

    # Looser check against the pure-f32, PyTorch-faithful forward (with b1).
    ref_f = _reference_f32(x, params)
    err_f = float(jnp.max(jnp.abs(out - ref_f)))
    assert jnp.allclose(out, ref_f, atol=2e-2, rtol=2e-2), err_f

    print("KERNEL_OK")
</pallas_src>

<mosaic_0001>
module attributes {stable_mosaic.version = 11 : i64} {
  func.func @_linear1_stats_kernel(%arg0: i32, %arg1: i32, %arg2: memref<16x32xbf16, #tpu.memory_space<vmem>>, %arg3: memref<32x128xbf16, #tpu.memory_space<vmem>>, %arg4: memref<16x128xbf16, #tpu.memory_space<vmem>>, %arg5: memref<8x128xf32, #tpu.memory_space<vmem>>, %arg6: memref<16x128xf32, #tpu.memory_space<vmem>>) attributes {dimension_semantics = [#tpu.dimension_semantics<parallel>, #tpu.dimension_semantics<arbitrary>], iteration_bounds = array<i64: 1, 1>, scalar_prefetch = 0 : i64, scratch_operands = 1 : i64, tpu.core_type = #tpu.core_type<tc>, window_params = [{transform_indices = @transform_0, window_bounds = array<i64: 16, 32>}, {transform_indices = @transform_1, window_bounds = array<i64: 32, 128>}, {transform_indices = @transform_2, window_bounds = array<i64: 16, 128>}, {transform_indices = @transform_3, window_bounds = array<i64: 8, 128>}]} {
    %c0_i32 = arith.constant 0 : i32
    %0 = arith.cmpi eq, %arg1, %c0_i32 : i32
    %1 = arith.extui %0 : i1 to i32
    %c0_i32_0 = arith.constant 0 : i32
    %2 = arith.cmpi ne, %1, %c0_i32_0 : i32
    scf.if %2 {
      %cst_10 = arith.constant 0.000000e+00 : f32
      %12 = vector.broadcast %cst_10 : f32 to vector<16x128xf32>
      %c0_11 = arith.constant 0 : index
      %c0_12 = arith.constant 0 : index
      %13 = vector.load %arg6[%c0_11, %c0_12] : memref<16x128xf32, #tpu.memory_space<vmem>>, vector<16x128xf32>
      tpu.vector_store %arg6[%c0_11, %c0_12], %12 {strides = array<i32>} : memref<16x128xf32, #tpu.memory_space<vmem>>, vector<16x128xf32>,
    } else {
    }
    %c0 = arith.constant 0 : index
    %c0_1 = arith.constant 0 : index
    %3 = vector.load %arg6[%c0, %c0_1] : memref<16x128xf32, #tpu.memory_space<vmem>>, vector<16x128xf32>
    %c0_2 = arith.constant 0 : index
    %c0_3 = arith.constant 0 : index
    %4 = vector.load %arg2[%c0_2, %c0_3] : memref<16x32xbf16, #tpu.memory_space<vmem>>, vector<16x32xbf16>
    %c0_4 = arith.constant 0 : index
    %c0_5 = arith.constant 0 : index
    %5 = vector.load %arg3[%c0_4, %c0_5] : memref<32x128xbf16, #tpu.memory_space<vmem>>, vector<32x128xbf16>
    %cst = arith.constant dense<0.000000e+00> : vector<16x128xf32>
    %6 = tpu.matmul %4, %5, %cst {dimension_numbers = #tpu.dot_dimension_numbers<[1], [0], [0], [1], [0, 0, 1, 1], [], []>} : vector<16x32xbf16>, vector<32x128xbf16>, vector<16x128xf32> -> vector<16x128xf32>
    %7 = arith.addf %3, %6 : vector<16x128xf32>
    %c0_6 = arith.constant 0 : index
    %c0_7 = arith.constant 0 : index
    %8 = vector.load %arg6[%c0_6, %c0_7] : memref<16x128xf32, #tpu.memory_space<vmem>>, vector<16x128xf32>
    tpu.vector_store %arg6[%c0_6, %c0_7], %7 {strides = array<i32>} : memref<16x128xf32, #tpu.memory_space<vmem>>, vector<16x128xf32>,
    %c0_i32_8 = arith.constant 0 : i32
    %9 = arith.cmpi eq, %arg1, %c0_i32_8 : i32
    %10 = arith.extui %9 : i1 to i32
    %c0_i32_9 = arith.constant 0 : i32
    %11 = arith.cmpi ne, %10, %c0_i32_9 : i32
    scf.if %11 {
      %c0_10 = arith.constant 0 : index
      %c0_11 = arith.constant 0 : index
      %12 = vector.load %arg6[%c0_10, %c0_11] : memref<16x128xf32, #tpu.memory_space<vmem>>, vector<16x128xf32>
      %13 = arith.truncf %12 : vector<16x128xf32> to vector<16x128xbf16>
      %c0_12 = arith.constant 0 : index
      %c0_13 = arith.constant 0 : index
      %14 = vector.load %arg4[%c0_12, %c0_13] : memref<16x128xbf16, #tpu.memory_space<vmem>>, vector<16x128xbf16>
      tpu.vector_store %arg4[%c0_12, %c0_13], %13 {strides = array<i32>} : memref<16x128xbf16, #tpu.memory_space<vmem>>, vector<16x128xbf16>,
      %cst_14 = arith.constant 1.000000e+00 : f32
      %15 = vector.broadcast %cst_14 : f32 to vector<1x16xf32>
      %cst_15 = arith.constant dense<0.000000e+00> : vector<1x128xf32>
      %16 = tpu.matmul %15, %12, %cst_15 {dimension_numbers = #tpu.dot_dimension_numbers<[1], [0], [0], [1], [0, 0, 1, 1], [], []>} : vector<1x16xf32>, vector<16x128xf32>, vector<1x128xf32> -> vector<1x128xf32>
      %17 = arith.mulf %12, %12 : vector<16x128xf32>
      %cst_16 = arith.constant dense<0.000000e+00> : vector<1x128xf32>
      %18 = tpu.matmul %15, %17, %cst_16 {dimension_numbers = #tpu.dot_dimension_numbers<[1], [0], [0], [1], [0, 0, 1, 1], [], []>} : vector<1x16xf32>, vector<16x128xf32>, vector<1x128xf32> -> vector<1x128xf32>
      %cst_17 = arith.constant 0.000000e+00 : f32
      %19 = vector.broadcast %cst_17 : f32 to vector<6x128xf32>
      %20 = tpu.concatenate %16, %18, %19 in 0 : vector<1x128xf32>, vector<1x128xf32>, vector<6x128xf32> -> vector<8x128xf32>
      %c0_18 = arith.constant 0 : index
      %c0_19 = arith.constant 0 : index
      %21 = vector.load %arg5[%c0_18, %c0_19] : memref<8x128xf32, #tpu.memory_space<vmem>>, vector<8x128xf32>
      tpu.vector_store %arg5[%c0_18, %c0_19], %20 {strides = array<i32>} : memref<8x128xf32, #tpu.memory_space<vmem>>, vector<8x128xf32>,
    } else {
    }
    return
  }
  func.func @transform_0(%arg0: i32, %arg1: i32) -> (i32, i32) {
    %c0_i32 = arith.constant 0 : i32
    return %arg0, %arg1 : i32, i32
  }
  func.func @transform_1(%arg0: i32, %arg1: i32) -> (i32, i32) {
    %c0_i32 = arith.constant 0 : i32
    %c0_i32_0 = arith.constant 0 : i32
    return %arg1, %c0_i32 : i32, i32
  }
  func.func @transform_2(%arg0: i32, %arg1: i32) -> (i32, i32) {
    %c0_i32 = arith.constant 0 : i32
    %c0_i32_0 = arith.constant 0 : i32
    return %arg0, %c0_i32 : i32, i32
  }
  func.func @transform_3(%arg0: i32, %arg1: i32) -> (i32, i32) {
    %c0_i32 = arith.constant 0 : i32
    %c0_i32_0 = arith.constant 0 : i32
    return %arg0, %c0_i32 : i32, i32
  }
}

</mosaic_0001>

<bundles_post_ra>
// kernel: tpu_custom_call.1
= control target key start
LH: loop header
LB: loop body
LE: loop exit
PB: predicated region body
PF: predicated region fallthrough
CT: control target
= control target key end

     0   :  { %9 = vsyncpa [#allocation4], 0  ;;  %s524_s0 = inlined_call_operand.hbm [shape: bf16[16,32], index: 0, kind: input, shape index: {}]   ;;  %s525_s1 = inlined_call_operand.hbm [shape: bf16[32,128], index: 1, kind: input, shape index: {}]   ;;  %s526_s2 = inlined_call_operand.hbm [shape: bf16[16,128], index: 2, kind: output, shape index: {0}]   ;;  %s527_s3 = inlined_call_operand.hbm [shape: f32[8,128], index: 3, kind: output, shape index: {1}]  }
   0x1   :  { %10 = vsyncpa [#allocation7], 0 }
   0x2   :  { %11 = vsyncpa [#allocation5], 0 }
   0x3   :  { %12 = vsyncpa [#allocation10], 0  ;;  %s471_s12 = smov [#allocation3]  }
   0x4   :  { %s18_s13 = sshll.u32 %s471_s12, 4  ;;  %s19_s13 = int_to_ptr.vmem [resolvable:$true] %s18_s13 }
   0x5   :  { %s391_s14 = scalar_lea.vmem %s19_s13, 128  ;;  %p396_p1 = scmp.lt.s32.totalorder %s19_s13, %s19_s13 }
   0x6   :  { %p392_p0 = scmp.ne.s32.totalorder %s19_s13, %s391_s14  ;;  %p397_p2 = scmp.lt.s32.totalorder %s391_s14, %s391_s14 }
   0x8   :  { %p398_p3 = por %p397_p2, %p396_p1 }
   0xa   :  { %p399_p4 = pnand %p398_p3, %p392_p0 }
   0xc   :  { %402 = shalt.err (!%p399_p4)
}
   0xd   :  { %s472_s15 = smov 64   ;;  %s473_s16 = smov 4  }
   0xe   :  { %24 = dma.hbm_to_vmem [thread:$0]  %s524_s0, 128, %s19_s13, [#allocation4], %s472_s15, %s472_s15, %s473_s16  }
   0xf   :  { %s474_s19 = smov [#allocation6]  }
  0x10   :  { %s30_s20 = sshll.u32 %s474_s19, 4  ;;  %s31_s20 = int_to_ptr.vmem [resolvable:$true] %s30_s20 }
  0x11   :  { %s411_s21 = scalar_lea.vmem %s31_s20, 256  ;;  %p416_p6 = scmp.lt.s32.totalorder %s31_s20, %s31_s20 }
  0x12   :  { %p412_p5 = scmp.ne.s32.totalorder %s31_s20, %s411_s21  ;;  %p417_p7 = scmp.lt.s32.totalorder %s411_s21, %s411_s21 }
  0x14   :  { %p418_p8 = por %p417_p7, %p416_p6 }
  0x16   :  { %p419_p9 = pnand %p418_p8, %p412_p5 }
  0x18   :  { %422 = shalt.err (!%p419_p9)
}
  0x19   :  { %36 = dma.hbm_to_vmem [thread:$0]  %s525_s1, 256, %s31_s20, [#allocation7], %s472_s15, %s472_s15, %s473_s16  }
  0x1a   :  { %463 = dma.done.wait [#allocation4], 128  }
  0x1b   :  { %464 = vsyncadd [#allocation4], 4294967168 }
  0x1c   :  { %465 = dma.done.wait [#allocation7], 256  }
  0x1d   :  { %466 = vsyncadd [#allocation7], 4294967040  ;;  %v475_v0 = vmov 0.0   ;;  %vm476_vm0 = vmmov 0   ;;  %v380_v1 = vld [vmem:[#allocation6 + $0x8] sm:$0xff]   ;;  %v381_v2 = vld [vmem:[#allocation6] sm:$0xff]  }
  0x1e   :  { %349 = vmatprep.subr.bf16.mxu0 %v475_v0  ;;  %353 = vmatprep.mubr.msk.bf16.mxu0 %vm476_vm0, %v475_v0  ;;  %v382_v3 = vld [vmem:[#allocation3] sm:$0xff]   ;;  %vm75_vm1 = vcmask 261120   ;;  %vm139_vm2 = vcmask 130048   ;;  %v477_v10 = vmov 1.0   ;;  %s478_s0 = smov [#allocation8]  }
  0x1f   :  { %357 = vmatprep.subr.mxu1 %v475_v0  ;;  %361 = vmatprep.mubr.msk.f32.mxu1 %vm476_vm0, %v475_v0  ;;  %s298_s1 = sshll.u32 %s478_s0, 4  ;;  %s299_s1 = int_to_ptr.vmem [resolvable:$true] %s298_s1 }
  0x20   :  { %350 = vmatpush3.bf16.msra.mxu0 %v380_v1  ;;  %s423_s24 = scalar_lea.vmem %s299_s1, 128  ;;  %p428_p11 = scmp.lt.s32.totalorder %s299_s1, %s299_s1 }
  0x21   :  { %351 = vmatprep.subr.bf16.mxu0 %v475_v0  ;;  %p424_p10 = scmp.ne.s32.totalorder %s299_s1, %s423_s24  ;;  %p429_p12 = scmp.lt.s32.totalorder %s423_s24, %s423_s24 }
  0x23   :  { %p430_p13 = por %p429_p12, %p428_p11 }
  0x24   :  { %352 = vmatpush3.bf16.msra.mxu0 %v381_v2 }
  0x25   :  { %p431_p0 = pnand %p430_p13, %p424_p10 }
  0x27   :  { %354 = vmatmul.mubr.msk.bf16.vlgmr.msra.gmra.mxu0 %vm75_vm1, %v382_v3 }
  0xe7   :  { %v113_v4 = vpop.f32.mrf.mxu0 }
  0xe8   :  { %v213_v11 = vmul.f32 %v113_v4, %v113_v4 }
  0xe9   :  { %v355_v5 = vpop.f32.mrf.mxu0 }
  0xeb   :  { %v116_v6 = vpop.f32.mrf.mxu0 }
  0xec   :  { %v338_v7 = vpack.c.bf16 %v116_v6, %v113_v4  ;;  %358 = vmatpush3.msra.mxu1 %v116_v6  ;;  %v214_v9 = vmul.f32 %v116_v6, %v116_v6 }
  0xed   :  { %v356_v8 = vpop.f32.mrf.mxu0  ;;  %359 = vmatprep.subr.mxu1 %v475_v0 }
  0xee   :  { %339 = vst [vmem:[#allocation8] sm:$0xff] %v338_v7   ;;  %360 = vmatpush3.msra.mxu1 %v113_v4 }
  0xef   :  { %362 = vmatmul.mubr.msk.f32.vlgmr.msra.gmra.mxu1 %vm139_vm2, %v477_v10  ;;  %364 = vmatprep.subr.mxu1 %v475_v0 }
  0xf0   :  { %365 = vmatpush3.msra.mxu1 %v214_v9  ;;  %368 = vmatprep.mubr.msk.f32.mxu1 %vm476_vm0, %v475_v0 }
  0xf1   :  { %366 = vmatprep.subr.mxu1 %v475_v0 }
  0xf2   :  { %367 = vmatpush3.msra.mxu1 %v213_v11 }
  0xf3   :  { %369 = vmatmul.mubr.msk.f32.vlgmr.msra.gmra.mxu1 %vm139_vm2, %v477_v10 }
  0xf4   :  { %434 = shalt.err (!%p431_p0)
}
  0xf5   :  { %304 = dma.vmem_to_hbm [thread:$0]  %s299_s1, 128, %s526_s2, [#allocation5], %s472_s15, %s472_s15, %s473_s16   ;;  %vm288_vm3 = vcmask 1040384   ;;  %vm290_vm4 = vcmask 1041408  }
  0xf6   :  { %s479_s27 = smov [#allocation9]  }
  0xf7   :  { %s311_s28 = sshll.u32 %s479_s27, 4  ;;  %s312_s28 = int_to_ptr.vmem [resolvable:$true] %s311_s28 }
  0xf8   :  { %s443_s29 = scalar_lea.vmem %s312_s28, 128  ;;  %p448_p2 = scmp.lt.s32.totalorder %s312_s28, %s312_s28 }
  0xf9   :  { %p444_p1 = scmp.ne.s32.totalorder %s312_s28, %s443_s29  ;;  %p449_p3 = scmp.lt.s32.totalorder %s443_s29, %s443_s29 }
  0xfb   :  { %p450_p4 = por %p449_p3, %p448_p2 }
  0xfd   :  { %p451_p5 = pnand %p450_p4, %p444_p1 }
 0x1af   :  { %v209_v12 = vpop.f32.mrf.mxu1 }
 0x1b1   :  { %v363_v13 = vpop.f32.mrf.mxu1 }
 0x1b3   :  { %v281_v14 = vpop.f32.mrf.mxu1 }
 0x1b4   :  { %v286_v15 = vrot.slane %v281_v14, 7 }
 0x1b5   :  { %v370_v16 = vpop.f32.mrf.mxu1 }
 0x1b6   :  { %v289_v17 = vsel %vm288_vm3, %v209_v12, %v286_v15 }
 0x1b7   :  { %v291_v18 = vsel %vm290_vm4, %v289_v17, 0.0 }
 0x1b8   :  { %292 = vst [vmem:[#allocation9] sm:$0xff] %v291_v18 }
 0x1b9   :  { %454 = shalt.err (!%p451_p5)
}
 0x1ba   :  { %314 = dma.vmem_to_hbm [thread:$0]  %s312_s28, 128, %s527_s3, [#allocation10]  }
 0x1bb   :  { %467 = dma.done.wait [#allocation5], 128  }
 0x1bc   :  { %468 = vsyncadd [#allocation5], 4294967168 }
 0x1bd   :  { %469 = dma.done.wait [#allocation10], 128  }
 0x1be   :  { %470 = vsyncadd [#allocation10], 4294967168 }
 0x1bf   :  { %321 = vsyncpa [#allocation4], 1 }
 0x1c0   :  { %322 = vsyncpa [#allocation7], 1 }
 0x1c1   :  { %323 = vsyncpa [#allocation5], 1 }
 0x1c2   :  { %324 = vsyncpa [#allocation10], 1 }

</bundles_post_ra>
